<compile_context>
chip_gen: v5e
topology: v5e:2x2
jax: 0.10.0
libtpu: 0.0.40
codegen_flags: <defaults>
</compile_context>

<pallas_src>
import jax
import jax.numpy as jnp
import numpy as np
from jax.experimental import pallas as pl
from jax.experimental.pallas import tpu as pltpu


def _transition_kernel(x00_ref, x01_ref, x10_ref, x11_ref,
                       scale_ref, shift_ref, w_ref, o_ref):
    # x??_ref : (1, Cin, T)  — the four 2x2-pool phases, pooled-spatial flattened on the lane axis
    # scale   : (Cin, 1), shift: (Cin, 1)  — BN folded into a per-channel affine
    # w_ref   : (Cout, Cin)  — conv weight with the 0.25 avg-pool factor folded in
    # o_ref   : (1, Cout, T) — NCHW-native (flattened spatial), lane-dense
    s = scale_ref[...]                     # (Cin, 1) -> lane-broadcast over (Cin, T)
    b = shift_ref[...]

    def bn_relu(v):                        # VPU elementwise
        return jnp.maximum(v * s + b, 0.0)

    # 2x2 average pool = sum of the four phases (the /4 lives in w) — pure VPU adds, no P matrix.
    zp = (bn_relu(x00_ref[0]) + bn_relu(x01_ref[0])
          + bn_relu(x10_ref[0]) + bn_relu(x11_ref[0]))                    # (Cin, T)

    # 1x1 conv on the pooled activations: single MXU matmul (Cout, Cin) @ (Cin, T).
    y = jnp.dot(w_ref[...], zp, preferred_element_type=jnp.float32)      # (Cout, T)
    o_ref[0] = y.astype(o_ref.dtype)


def _pick_spatial_tile(s):
    # Largest lane-dense tile that divides the pooled spatial extent; fall back to the full extent.
    for t in (2048, 1024, 512, 256, 128):
        if s % t == 0:
            return t
    return s


@jax.jit
def transition_forward(x_nchw, gamma, beta, running_mean, running_var, conv_w_oc_ic):
    """x_nchw: (N, Cin, H, W) f32.  conv_w_oc_ic: (Cout, Cin) (the (Cout,Cin,1,1) weight squeezed).
    Returns (N, Cout, H//2, W//2) f32, matching the PyTorch module in eval mode."""
    eps = 1e-5
    N, Cin, H, W = x_nchw.shape
    Cout = conv_w_oc_ic.shape[0]
    Hh, Wh = H // 2, W // 2
    S = Hh * Wh
    T = _pick_spatial_tile(S)

    # Fold BN (inference) into per-channel scale/shift.
    scale = (gamma / jnp.sqrt(running_var + eps)).astype(jnp.float32)
    shift = (beta - running_mean * scale).astype(jnp.float32)
    scale2 = scale.reshape(Cin, 1)
    shift2 = shift.reshape(Cin, 1)

    # Fold the avg-pool 1/4 into the conv weight (already (Cout, Cin) oriented for the MXU).
    w2 = conv_w_oc_ic.astype(jnp.float32) * 0.25

    # Deinterleave the 2x2 pooling phases (XLA strided slices; the trailing reshape is free since it
    # only merges contiguous dims).  Crop first so odd H/W match PyTorch AvgPool2d floor behavior.
    xc = x_nchw[:, :, :2 * Hh, :2 * Wh]

    def phase(dh, dw):
        return xc[:, :, dh::2, dw::2].reshape(N, Cin, S)

    x00, x01, x10, x11 = phase(0, 0), phase(0, 1), phase(1, 0), phase(1, 1)

    x_spec = pl.BlockSpec((1, Cin, T), lambda n, t: (n, 0, t))
    vec_spec = pl.BlockSpec((Cin, 1), lambda n, t: (0, 0))

    out_flat = pl.pallas_call(
        _transition_kernel,
        out_shape=jax.ShapeDtypeStruct((N, Cout, S), jnp.float32),
        grid_spec=pltpu.PrefetchScalarGridSpec(
            num_scalar_prefetch=0,
            grid=(N, S // T),
            in_specs=[
                x_spec, x_spec, x_spec, x_spec,
                vec_spec, vec_spec,
                pl.BlockSpec((Cout, Cin), lambda n, t: (0, 0)),
            ],
            out_specs=pl.BlockSpec((1, Cout, T), lambda n, t: (n, 0, t)),
        ),
        compiler_params=pltpu.CompilerParams(
            dimension_semantics=("parallel", "parallel"),
        ),
    )(x00, x01, x10, x11, scale2, shift2, w2)

    # Free reshape back to NCHW spatial dims — no transpose needed.
    return out_flat.reshape(N, Cout, Hh, Wh)


def _reference(x_nchw, gamma, beta, running_mean, running_var, conv_w_oc_ic):
    eps = 1e-5
    xn = (x_nchw - running_mean[None, :, None, None]) / jnp.sqrt(
        running_var[None, :, None, None] + eps
    )
    xn = xn * gamma[None, :, None, None] + beta[None, :, None, None]
    z = jnp.maximum(xn, 0.0)
    y = jnp.einsum("nchw,oc->nohw", z, conv_w_oc_ic)
    p = (y[:, :, 0::2, 0::2] + y[:, :, 1::2, 0::2]
         + y[:, :, 0::2, 1::2] + y[:, :, 1::2, 1::2]) * 0.25
    return p


if __name__ == "__main__":
    # Small shapes consistent with the module: N=2, Cin=8, H=W=16, Cout=4.
    N, Cin, H, W = 2, 8, 16, 16
    Cout = 4

    key = jax.random.PRNGKey(0)
    kx, kg, kb, km, kv, kw = jax.random.split(key, 6)

    x = jax.random.normal(kx, (N, Cin, H, W), dtype=jnp.float32)
    gamma = 1.0 + 0.1 * jax.random.normal(kg, (Cin,), dtype=jnp.float32)
    beta = 0.1 * jax.random.normal(kb, (Cin,), dtype=jnp.float32)
    running_mean = 0.1 * jax.random.normal(km, (Cin,), dtype=jnp.float32)
    running_var = 1.0 + 0.1 * jax.random.uniform(kv, (Cin,), dtype=jnp.float32)
    # Conv2d(Cin, Cout, kernel_size=1, bias=False) weight: (Cout, Cin, 1, 1) -> (Cout, Cin)
    conv_w = (1.0 / np.sqrt(Cin)) * jax.random.normal(kw, (Cout, Cin), dtype=jnp.float32)

    out = transition_forward(x, gamma, beta, running_mean, running_var, conv_w)
    out = jax.block_until_ready(out)

    ref = _reference(x, gamma, beta, running_mean, running_var, conv_w)
    assert out.shape == (N, Cout, H // 2, W // 2), out.shape
    np.testing.assert_allclose(np.asarray(out), np.asarray(ref), rtol=1e-4, atol=1e-4)

    print("KERNEL_OK")
</pallas_src>

<mosaic_0001>
module attributes {stable_mosaic.version = 11 : i64} {
  func.func @_transition_kernel(%arg0: i32, %arg1: i32, %arg2: memref<1x8x64xf32, #tpu.memory_space<vmem>>, %arg3: memref<1x8x64xf32, #tpu.memory_space<vmem>>, %arg4: memref<1x8x64xf32, #tpu.memory_space<vmem>>, %arg5: memref<1x8x64xf32, #tpu.memory_space<vmem>>, %arg6: memref<8x1xf32, #tpu.memory_space<vmem>>, %arg7: memref<8x1xf32, #tpu.memory_space<vmem>>, %arg8: memref<4x8xf32, #tpu.memory_space<vmem>>, %arg9: memref<1x4x64xf32, #tpu.memory_space<vmem>>) attributes {dimension_semantics = [#tpu.dimension_semantics<parallel>, #tpu.dimension_semantics<parallel>], iteration_bounds = array<i64: 2, 1>, scalar_prefetch = 0 : i64, scratch_operands = 0 : i64, tpu.core_type = #tpu.core_type<tc>, window_params = [{transform_indices = @transform_0, window_bounds = array<i64: 1, 8, 64>}, {transform_indices = @transform_1, window_bounds = array<i64: 1, 8, 64>}, {transform_indices = @transform_2, window_bounds = array<i64: 1, 8, 64>}, {transform_indices = @transform_3, window_bounds = array<i64: 1, 8, 64>}, {pipeline_mode = #tpu.pipeline_mode<synchronous>, transform_indices = @transform_4, window_bounds = array<i64: 8, 1>}, {pipeline_mode = #tpu.pipeline_mode<synchronous>, transform_indices = @transform_5, window_bounds = array<i64: 8, 1>}, {pipeline_mode = #tpu.pipeline_mode<synchronous>, transform_indices = @transform_6, window_bounds = array<i64: 4, 8>}, {transform_indices = @transform_7, window_bounds = array<i64: 1, 4, 64>}]} {
    %c0 = arith.constant 0 : index
    %c0_0 = arith.constant 0 : index
    %0 = vector.load %arg6[%c0, %c0_0] : memref<8x1xf32, #tpu.memory_space<vmem>>, vector<8x1xf32>
    %c0_1 = arith.constant 0 : index
    %c0_2 = arith.constant 0 : index
    %1 = vector.load %arg7[%c0_1, %c0_2] : memref<8x1xf32, #tpu.memory_space<vmem>>, vector<8x1xf32>
    %c0_3 = arith.constant 0 : index
    %c0_4 = arith.constant 0 : index
    %c0_5 = arith.constant 0 : index
    %2 = vector.load %arg2[%c0_3, %c0_4, %c0_5] : memref<1x8x64xf32, #tpu.memory_space<vmem>>, vector<1x8x64xf32>
    %3 = vector.shape_cast %2 : vector<1x8x64xf32> to vector<8x64xf32>
    %4 = vector.broadcast %0 : vector<8x1xf32> to vector<8x64xf32>
    %5 = arith.mulf %3, %4 : vector<8x64xf32>
    %6 = vector.broadcast %1 : vector<8x1xf32> to vector<8x64xf32>
    %7 = arith.addf %5, %6 : vector<8x64xf32>
    %cst = arith.constant 0.000000e+00 : f32
    %8 = vector.broadcast %cst : f32 to vector<8x64xf32>
    %9 = arith.maximumf %7, %8 : vector<8x64xf32>
    %c0_6 = arith.constant 0 : index
    %c0_7 = arith.constant 0 : index
    %c0_8 = arith.constant 0 : index
    %10 = vector.load %arg3[%c0_6, %c0_7, %c0_8] : memref<1x8x64xf32, #tpu.memory_space<vmem>>, vector<1x8x64xf32>
    %11 = vector.shape_cast %10 : vector<1x8x64xf32> to vector<8x64xf32>
    %12 = vector.broadcast %0 : vector<8x1xf32> to vector<8x64xf32>
    %13 = arith.mulf %11, %12 : vector<8x64xf32>
    %14 = vector.broadcast %1 : vector<8x1xf32> to vector<8x64xf32>
    %15 = arith.addf %13, %14 : vector<8x64xf32>
    %cst_9 = arith.constant 0.000000e+00 : f32
    %16 = vector.broadcast %cst_9 : f32 to vector<8x64xf32>
    %17 = arith.maximumf %15, %16 : vector<8x64xf32>
    %18 = arith.addf %9, %17 : vector<8x64xf32>
    %c0_10 = arith.constant 0 : index
    %c0_11 = arith.constant 0 : index
    %c0_12 = arith.constant 0 : index
    %19 = vector.load %arg4[%c0_10, %c0_11, %c0_12] : memref<1x8x64xf32, #tpu.memory_space<vmem>>, vector<1x8x64xf32>
    %20 = vector.shape_cast %19 : vector<1x8x64xf32> to vector<8x64xf32>
    %21 = vector.broadcast %0 : vector<8x1xf32> to vector<8x64xf32>
    %22 = arith.mulf %20, %21 : vector<8x64xf32>
    %23 = vector.broadcast %1 : vector<8x1xf32> to vector<8x64xf32>
    %24 = arith.addf %22, %23 : vector<8x64xf32>
    %cst_13 = arith.constant 0.000000e+00 : f32
    %25 = vector.broadcast %cst_13 : f32 to vector<8x64xf32>
    %26 = arith.maximumf %24, %25 : vector<8x64xf32>
    %27 = arith.addf %18, %26 : vector<8x64xf32>
    %c0_14 = arith.constant 0 : index
    %c0_15 = arith.constant 0 : index
    %c0_16 = arith.constant 0 : index
    %28 = vector.load %arg5[%c0_14, %c0_15, %c0_16] : memref<1x8x64xf32, #tpu.memory_space<vmem>>, vector<1x8x64xf32>
    %29 = vector.shape_cast %28 : vector<1x8x64xf32> to vector<8x64xf32>
    %30 = vector.broadcast %0 : vector<8x1xf32> to vector<8x64xf32>
    %31 = arith.mulf %29, %30 : vector<8x64xf32>
    %32 = vector.broadcast %1 : vector<8x1xf32> to vector<8x64xf32>
    %33 = arith.addf %31, %32 : vector<8x64xf32>
    %cst_17 = arith.constant 0.000000e+00 : f32
    %34 = vector.broadcast %cst_17 : f32 to vector<8x64xf32>
    %35 = arith.maximumf %33, %34 : vector<8x64xf32>
    %36 = arith.addf %27, %35 : vector<8x64xf32>
    %c0_18 = arith.constant 0 : index
    %c0_19 = arith.constant 0 : index
    %37 = vector.load %arg8[%c0_18, %c0_19] : memref<4x8xf32, #tpu.memory_space<vmem>>, vector<4x8xf32>
    %cst_20 = arith.constant dense<0.000000e+00> : vector<4x64xf32>
    %38 = tpu.matmul %37, %36, %cst_20 {dimension_numbers = #tpu.dot_dimension_numbers<[1], [0], [0], [1], [0, 0, 1, 1], [], []>} : vector<4x8xf32>, vector<8x64xf32>, vector<4x64xf32> -> vector<4x64xf32>
    %c0_21 = arith.constant 0 : index
    %c0_22 = arith.constant 0 : index
    %c0_23 = arith.constant 0 : index
    %39 = vector.load %arg9[%c0_21, %c0_22, %c0_23] : memref<1x4x64xf32, #tpu.memory_space<vmem>>, vector<1x4x64xf32>
    %40 = vector.shape_cast %39 : vector<1x4x64xf32> to vector<4x64xf32>
    %41 = vector.shape_cast %38 : vector<4x64xf32> to vector<1x4x64xf32>
    tpu.vector_store %arg9[%c0_21, %c0_22, %c0_23], %41 {strides = array<i32>} : memref<1x4x64xf32, #tpu.memory_space<vmem>>, vector<1x4x64xf32>,
    return
  }
  func.func @transform_0(%arg0: i32, %arg1: i32) -> (i32, i32, i32) {
    %c0_i32 = arith.constant 0 : i32
    %c0_i32_0 = arith.constant 0 : i32
    return %arg0, %c0_i32, %arg1 : i32, i32, i32
  }
  func.func @transform_1(%arg0: i32, %arg1: i32) -> (i32, i32, i32) {
    %c0_i32 = arith.constant 0 : i32
    %c0_i32_0 = arith.constant 0 : i32
    return %arg0, %c0_i32, %arg1 : i32, i32, i32
  }
  func.func @transform_2(%arg0: i32, %arg1: i32) -> (i32, i32, i32) {
    %c0_i32 = arith.constant 0 : i32
    %c0_i32_0 = arith.constant 0 : i32
    return %arg0, %c0_i32, %arg1 : i32, i32, i32
  }
  func.func @transform_3(%arg0: i32, %arg1: i32) -> (i32, i32, i32) {
    %c0_i32 = arith.constant 0 : i32
    %c0_i32_0 = arith.constant 0 : i32
    return %arg0, %c0_i32, %arg1 : i32, i32, i32
  }
  func.func @transform_4(%arg0: i32, %arg1: i32) -> (i32, i32) {
    %c0_i32 = arith.constant 0 : i32
    %c0_i32_0 = arith.constant 0 : i32
    %c0_i32_1 = arith.constant 0 : i32
    return %c0_i32, %c0_i32_0 : i32, i32
  }
  func.func @transform_5(%arg0: i32, %arg1: i32) -> (i32, i32) {
    %c0_i32 = arith.constant 0 : i32
    %c0_i32_0 = arith.constant 0 : i32
    %c0_i32_1 = arith.constant 0 : i32
    return %c0_i32, %c0_i32_0 : i32, i32
  }
  func.func @transform_6(%arg0: i32, %arg1: i32) -> (i32, i32) {
    %c0_i32 = arith.constant 0 : i32
    %c0_i32_0 = arith.constant 0 : i32
    %c0_i32_1 = arith.constant 0 : i32
    return %c0_i32, %c0_i32_0 : i32, i32
  }
  func.func @transform_7(%arg0: i32, %arg1: i32) -> (i32, i32, i32) {
    %c0_i32 = arith.constant 0 : i32
    %c0_i32_0 = arith.constant 0 : i32
    return %arg0, %c0_i32, %arg1 : i32, i32, i32
  }
}

</mosaic_0001>

<bundles_post_ra>
// kernel: transition_forward.1
= control target key start
LH: loop header
LB: loop body
LE: loop exit
PB: predicated region body
PF: predicated region fallthrough
CT: control target
= control target key end

     0   :  { %s670_s24 = smov 0   ;;  %s672_s25 = smov 0   ;;  %s725_s0 = inlined_call_operand.vmem [shape: f32[2,8,64], index: 0, kind: input, shape index: {}]   ;;  %s726_s1 = inlined_call_operand.vmem [shape: f32[2,8,64], index: 1, kind: input, shape index: {}]   ;;  %s727_s2 = inlined_call_operand.vmem [shape: f32[2,8,64], index: 2, kind: input, shape index: {}]   ;;  %s728_s3 = inlined_call_operand.vmem [shape: f32[2,8,64], index: 3, kind: input, shape index: {}]   ;;  %s729_s4 = inlined_call_operand.vmem [shape: f32[8,1], index: 4, kind: input, shape index: {}]   ;;  %s730_s5 = inlined_call_operand.vmem [shape: f32[8,1], index: 5, kind: input, shape index: {}]   ;;  %s731_s6 = inlined_call_operand.vmem [shape: f32[4,8], index: 6, kind: input, shape index: {}]   ;;  %s732_s7 = inlined_call_operand.vmem [shape: f32[2,4,64], index: 7, kind: output, shape index: {}]  }
   0x1   :  { %s674_s26 = smov 0  }
   0x2 LB: > { %s29_s27 = sadd.s32 1, %s623_s25  ;;  %p570_p0 = scmp.ge.s32.totalorder %s627_s26, 1  ;;  %s627_s26 = sphi %s674_s26, %s17_s26   ;;  %s623_s25 = sphi %s672_s25, %s734_s25   ;;  %s619_s24 = sphi %s670_s24, %s733_s24  }
   0x3   : > { %p31_p1 = scmp.ge.s32.totalorder %s29_s27, 2  ;;  %p297_p2 = scmp.lt.s32.totalorder %s627_s26, 3 }
   0x5   : > { %s736_s27 = smov (%p31_p1, %s29_s27), 0  ;;  %p298_p3 = pnand %p570_p0, %p297_p2 }
   0x6   : > { %p354_p4 = scmp.lt.s32.totalorder (!%p298_p3), %s619_s24, 1 }
   0x7   : > { %301 = sbr.rel (%p298_p3) target bundleno = 275 (0x113), region = 48 }
   0xc   : > { %v389_v0 = vld [vmem:[%s729_s4] sm:$0xff]  ;;  %v629_v1 = vmov 0   ;;  %s738_s24 = smov (!%p354_p4, %s619_s24), 1  ;;  %vm421_vm0 = vcmask 64512   ;;  %vm445_vm1 = vcmask 519168  }
   0xd   : > { %604 = vset.pattern.permute.xlu0 %v629_v1  ;;  %v390_v2 = vld [vmem:[%s730_s5] sm:$0xff]  ;;  %s571_s9 = sshll.u32 %s738_s24, 3  ;;  %s575_s28 = sshll.u32 %s738_s24, 2 }
   0xe   : > { %394 = vperm.xlu0 %604, %v389_v0   ;;  %s360_s12 = scalar_lea.vmem %s725_s0, %s571_s9  ;;  %s367_s15 = scalar_lea.vmem %s726_s1, %s571_s9  ;;  %v420_v24 = vld [vmem:[%s731_s6] sm:$0xf] }
   0xf   : > { %s374_s18 = scalar_lea.vmem %s727_s2, %s571_s9  ;;  %s381_s21 = scalar_lea.vmem %s728_s3, %s571_s9  ;;  %v391_v4 = vld [vmem:[%s360_s12] sm:$0xff] }
  0x10   : > { %v405_v5 = vld [vmem:[%s367_s15] sm:$0xff]  ;;  %s388_s8 = scalar_lea.vmem %s732_s7, %s575_s28 }
  0x11   : > { %v410_v6 = vld [vmem:[%s374_s18] sm:$0xff] }
  0x12   : > { %v415_v7 = vld [vmem:[%s381_s21] sm:$0xff] }
  0x16   : > { %400 = vperm.xlu0 %604, %v390_v2  }
  0x80   : > { %v395_v3 = vpop.permute.xlu0 %394 }
  0x81   : > { %v397_v8 = vmul.f32 %v395_v3, %v391_v4  ;;  %v406_v9 = vmul.f32 %v405_v5, %v395_v3  ;;  %v411_v10 = vmul.f32 %v410_v6, %v395_v3  ;;  %v416_v15 = vmul.f32 %v415_v7, %v395_v3 }
  0x88   : > { %v401_v11 = vpop.permute.xlu0 %400 }
  0x89   : > { %v403_v12 = vadd.f32 %v401_v11, %v397_v8  ;;  %v407_v13 = vadd.f32 %v406_v9, %v401_v11  ;;  %v412_v14 = vadd.f32 %v411_v10, %v401_v11  ;;  %v417_v18 = vadd.f32 %v416_v15, %v401_v11 }
  0x8b   : > { %v404_v16 = vmax.f32 %v403_v12, 0.0  ;;  %v408_v17 = vmax.f32 %v407_v13, 0.0  ;;  %v413_v20 = vmax.f32 %v412_v14, 0.0  ;;  %v418_v22 = vmax.f32 %v417_v18, 0.0 }
  0x8d   : > { %v409_v19 = vadd.f32 %v408_v17, %v404_v16 }
  0x8f   : > { %v414_v21 = vadd.f32 %v413_v20, %v409_v19 }
  0x91   : > { %v419_v23 = vadd.f32 %v418_v22, %v414_v21 }
  0x93   : > { %440 = vmatpush.msra.mxu0 %v419_v23 }
  0x94   : > { %576 = vmatmul.msk.f32.vlgmr.msra.gmra.mxu0 %vm421_vm0, %v420_v24 }
 0x111   : > { %v442_v25 = vpop.f32.mrf.mxu0 }
 0x112   : > { %446 = vst.msk [vmem:[%s388_s8] sm:$0xf] %vm445_vm1, %v442_v25 }
 0x113 PF: > { %s17_s26 = sadd.s32 1, %s627_s26   ;;  %s733_s24 = smov %s623_s25 }
 0x114   : > { %p14_p5 = scmp.ge.s32.totalorder %s17_s26, 4   ;;  %s734_s25 = smov %s736_s27 }
 0x116   :  { %16 = sbr.rel (!%p14_p5) target bundleno = 2 (0x2), region = 87 }

</bundles_post_ra>
